<compile_context>
chip_gen: v7x
topology: tpu7x:2x2x1
jax: 0.10.0
libtpu: 0.0.40
codegen_flags: <defaults>
</compile_context>

<pallas_src>
import functools

import jax
import jax.numpy as jnp
import numpy as np
from jax import lax
from jax.experimental import pallas as pl
from jax.experimental.pallas import tpu as pltpu


def _resident_spec(block_shape, index_map):
    """BlockSpec for a constant-index operand: single VMEM buffer (no double-buffer)."""
    try:
        return pl.BlockSpec(block_shape, index_map, pipeline_mode=pl.Buffered(1))
    except (TypeError, AttributeError):   # older jax without pipeline_mode / Buffered
        return pl.BlockSpec(block_shape, index_map)


def _vmem_capacity_bytes():
    try:
        return int(pltpu.get_tpu_info().vmem_capacity_bytes)
    except Exception:
        return 128 * 1024 * 1024   # v5e/v6e physical VMEM


# -----------------------------------------------------------------------------
# Shared-head K/V projection kernel: k = (x @ Wk + bk) / sqrt(D), v = x @ Wv + bv
# -----------------------------------------------------------------------------
def kv_proj_kernel(x_ref, wk_ref, bk_ref, wv_ref, bv_ref, k_ref, v_ref, *,
                   k_scale: float):
    x = x_ref[...]                                                       # (TS, H)
    k = jnp.dot(x, wk_ref[...], preferred_element_type=jnp.float32) + bk_ref[...]
    v = jnp.dot(x, wv_ref[...], preferred_element_type=jnp.float32) + bv_ref[...]
    k_ref[...] = (k * k_scale).astype(k_ref.dtype)   # fold 1/sqrt(D) into K once
    v_ref[...] = v.astype(v_ref.dtype)


def kv_projection(x, wk, bk, wv, bv, head_dim: int):
    B, S, H = x.shape
    D = head_dim
    if S <= 256:
        ts = S
    elif S % 256 == 0:
        ts = 256
    elif S % 128 == 0:
        ts = 128
    else:
        ts = S
    const = lambda b, st: (0, 0)
    kernel = functools.partial(kv_proj_kernel, k_scale=float(D) ** -0.5)
    return pl.pallas_call(
        kernel,
        out_shape=(jax.ShapeDtypeStruct((B, S, D), x.dtype),
                   jax.ShapeDtypeStruct((B, S, D), x.dtype)),
        grid=(B, S // ts),
        in_specs=[
            pl.BlockSpec((None, ts, H), lambda b, st: (b, st, 0)),  # x tile
            _resident_spec((H, D), const),                          # Wk
            _resident_spec((1, D), const),                          # bk
            _resident_spec((H, D), const),                          # Wv
            _resident_spec((1, D), const),                          # bv
        ],
        out_specs=(pl.BlockSpec((None, ts, D), lambda b, st: (b, st, 0)),
                   pl.BlockSpec((None, ts, D), lambda b, st: (b, st, 0))),
        compiler_params=pltpu.CompilerParams(
            dimension_semantics=("parallel", "parallel")),
    )(x, wk, bk, wv, bv)


# -----------------------------------------------------------------------------
# Fused attention + output-projection kernel
# -----------------------------------------------------------------------------
def mqa_attn_kernel(x_ref, wq_ref, bq_ref, k_ref, v_ref, wo_ref, bo_ref,
                    o_ref, qf_scr, mid_scr, *,
                    num_heads: int, head_dim: int, q_tile: int,
                    head_group: int, approx_recip: bool, exp_bf16: bool):
    nh, D, TQ, G = num_heads, head_dim, q_tile, head_group
    cdtype = x_ref.dtype   # MXU operand dtype (f32 or bf16); accumulation is f32.

    # Q projection for this (batch, query-tile) block; 1/sqrt(D) lives in K.
    q = jnp.dot(x_ref[...], wq_ref[...],
                preferred_element_type=jnp.float32) + bq_ref[...]        # (TQ, H) f32

    k = k_ref[...]                                                       # (S, D), pre-scaled
    v = v_ref[...]                                                       # (S, D)

    # Process heads in groups of G: fold G heads into the M (sublane) dim so
    # each group runs ONE score matmul / softmax / P@V, and the live f32
    # scores are (G*TQ, S) instead of (nh*TQ, S).
    for g in range(nh // G):
        # Slab-write the Q head slices (no jnp.concatenate copies).
        for i in range(G):
            h = g * G + i
            qf_scr[i * TQ:(i + 1) * TQ, :] = q[:, h * D:(h + 1) * D].astype(qf_scr.dtype)
        q_g = qf_scr[...]                                                # (G*TQ, D)

        # Scores: contract on D of both operands (no explicit K transpose).
        s = lax.dot_general(q_g, k, (((1,), (1,)), ((), ())),
                            preferred_element_type=jnp.float32)          # (G*TQ, S) f32
        s = s - jnp.max(s, axis=-1, keepdims=True)
        if exp_bf16:
            # v6e/v7x only: EUP does bf16 exp at higher throughput; s <= 0 so
            # bf16 exp is well-conditioned.  Row-sum stays f32.
            p = jnp.exp(s.astype(jnp.bfloat16))
            denom = jnp.sum(p.astype(jnp.float32), axis=-1, keepdims=True)
        else:
            p = jnp.exp(s)
            denom = jnp.sum(p, axis=-1, keepdims=True)                   # (G*TQ, 1)

        # Un-normalized P@V over the single shared V head; normalize the small
        # (G*TQ, D) result instead of the (G*TQ, S) probabilities.
        out_g = jnp.dot(p.astype(cdtype), v,
                        preferred_element_type=jnp.float32)              # (G*TQ, D) f32
        if approx_recip:
            out_g = out_g * pl.reciprocal(denom, approx=True)            # EUP slot
        else:
            out_g = out_g / denom

        # Un-fold this group's heads straight into the (TQ, H) merge slab.
        for i in range(G):
            h = g * G + i
            mid_scr[:, h * D:(h + 1) * D] = (
                out_g[i * TQ:(i + 1) * TQ, :].astype(mid_scr.dtype))

    # Output projection.
    out = jnp.dot(mid_scr[...], wo_ref[...],
                  preferred_element_type=jnp.float32) + bo_ref[...]      # (TQ, H) f32
    o_ref[...] = out.astype(o_ref.dtype)


def _estimate_vmem_bytes(S, H, D, TQ, G, dtype):
    """Per-grid-step VMEM: single-buffered resident weights, double-buffered
    x/out/K/V blocks, scratch slabs and the f32 intermediates (q, s, p, out)."""
    b = jnp.dtype(dtype).itemsize
    weights = (2 * H * H + 2 * H) * b               # Wq, Wo, bq, bo (Buffered(1))
    kv_blocks = 2 * 2 * S * D * b                   # K and V, double-buffered
    x_block = 2 * TQ * H * b
    out_block = 2 * TQ * H * b
    scratch = (G * TQ * D + TQ * H) * b
    f32_tmp = (TQ * H + 2 * G * TQ * S + G * TQ * D + TQ * H) * 4
    return weights + kv_blocks + x_block + out_block + scratch + f32_tmp


def mqa_forward(x, params, num_heads: int, *, q_tile=None, head_group=None,
                use_approx_recip=True, exp_in_bf16=False):
    """MultiQueryAttention forward (masks=None path)."""
    B, S, H = x.shape
    assert H % num_heads == 0
    D = H // num_heads
    wq, bq, wk, bk, wv, bv, wo, bo = params

    vmem_cap = _vmem_capacity_bytes()

    # Query tile: full-S for short sequences; 128 otherwise, or 256 on chips
    # with >= ~96 MiB VMEM (v5e/v6e) to better fill the 256-wide MXU (v7x's
    # 64 MiB cannot afford the larger f32 score slab).
    if q_tile is None:
        if S <= 128:
            q_tile = S
        elif vmem_cap >= 96 * 1024 * 1024 and S % 256 == 0:
            q_tile = 256
        else:
            q_tile = 128
    assert S % q_tile == 0, "seq_len must be a multiple of the query tile"
    assert q_tile == S or q_tile % 8 == 0
    if x.dtype == jnp.bfloat16:
        # bf16 packs 16 rows per sublane group; avoid packed-row relayouts.
        assert q_tile == S or q_tile % 16 == 0

    # Head-group size: fold G heads into M per score matmul, chosen so the
    # live f32 scores+probs (2 * G*TQ*S * 4B) stay within a VMEM budget.
    if head_group is None:
        budget = max(vmem_cap // 4, 8 * 1024 * 1024)
        head_group = num_heads
        while head_group > 1 and 2 * head_group * q_tile * S * 4 > budget:
            head_group -= 1
            while num_heads % head_group:
                head_group -= 1
    assert num_heads % head_group == 0

    # NOTE: best MXU utilization wants head_dim D to be a multiple of 128
    # (lane dim of K/V and the score contraction); smaller D is still correct.

    # 1) Shared-head K/V projection (1/sqrt(D) folded into K there).
    k, v = kv_projection(x, wk, bk, wv, bv, D)

    # 2) Fused attention + output projection.
    kernel = functools.partial(
        mqa_attn_kernel, num_heads=num_heads, head_dim=D, q_tile=q_tile,
        head_group=head_group, approx_recip=use_approx_recip,
        exp_bf16=exp_in_bf16)
    const = lambda b, qt: (0, 0)

    compiler_kwargs = dict(dimension_semantics=("parallel", "parallel"))
    est = _estimate_vmem_bytes(S, H, D, q_tile, head_group, x.dtype)
    if est > 16 * 1024 * 1024:
        compiler_kwargs["vmem_limit_bytes"] = min(
            max(int(est * 1.25), 32 * 1024 * 1024), int(vmem_cap * 0.8))

    return pl.pallas_call(
        kernel,
        out_shape=jax.ShapeDtypeStruct((B, S, H), x.dtype),
        grid=(B, S // q_tile),
        in_specs=[
            pl.BlockSpec((None, q_tile, H), lambda b, qt: (b, qt, 0)),  # x tile
            _resident_spec((H, H), const),                              # Wq
            _resident_spec((1, H), const),                              # bq
            pl.BlockSpec((None, S, D), lambda b, qt: (b, 0, 0)),        # K (pre-scaled)
            pl.BlockSpec((None, S, D), lambda b, qt: (b, 0, 0)),        # V
            _resident_spec((H, H), const),                              # Wo
            _resident_spec((1, H), const),                              # bo
        ],
        out_specs=pl.BlockSpec((None, q_tile, H), lambda b, qt: (b, qt, 0)),
        scratch_shapes=[
            pltpu.VMEM((head_group * q_tile, D), x.dtype),  # folded-Q slab
            pltpu.VMEM((q_tile, H), x.dtype),               # head-merge slab
        ],
        compiler_params=pltpu.CompilerParams(**compiler_kwargs),
    )(x, wq, bq, k, v, wo, bo)


# -----------------------------------------------------------------------------
# Pure-JAX reference (mirror of the PyTorch forward, masks = None)
# -----------------------------------------------------------------------------
def mqa_reference(x, params, num_heads: int):
    mm = functools.partial(jnp.matmul, precision="highest")
    B, S, H = x.shape
    D = H // num_heads
    wq, bq, wk, bk, wv, bv, wo, bo = params
    q = mm(x, wq) + bq                                         # (B, S, H)
    k = mm(x, wk) + bk                                         # (B, S, D)
    v = mm(x, wv) + bv                                         # (B, S, D)
    q = q.reshape(B, S, num_heads, D).transpose(0, 2, 1, 3)    # (B, nh, S, D)
    k = k.reshape(B, S, 1, D).transpose(0, 2, 1, 3)            # (B, 1, S, D)
    v = v.reshape(B, S, 1, D).transpose(0, 2, 1, 3)            # (B, 1, S, D)
    scores = mm(q, jnp.swapaxes(k, -1, -2)) / (D ** 0.5)       # (B, nh, S, S)
    probs = jax.nn.softmax(scores, axis=-1)
    out_mid = mm(probs, v)                                     # (B, nh, S, D)
    out_mid = out_mid.transpose(0, 2, 1, 3).reshape(B, S, H)
    return mm(out_mid, wo) + bo


def init_params(key, hidden_dim: int, head_dim: int):
    ks = jax.random.split(key, 8)
    scale = 0.1
    wq = scale * jax.random.normal(ks[0], (hidden_dim, hidden_dim), jnp.float32)
    bq = scale * jax.random.normal(ks[1], (1, hidden_dim), jnp.float32)
    wk = scale * jax.random.normal(ks[2], (hidden_dim, head_dim), jnp.float32)
    bk = scale * jax.random.normal(ks[3], (1, head_dim), jnp.float32)
    wv = scale * jax.random.normal(ks[4], (hidden_dim, head_dim), jnp.float32)
    bv = scale * jax.random.normal(ks[5], (1, head_dim), jnp.float32)
    wo = scale * jax.random.normal(ks[6], (hidden_dim, hidden_dim), jnp.float32)
    bo = scale * jax.random.normal(ks[7], (1, hidden_dim), jnp.float32)
    return (wq, bq, wk, bk, wv, bv, wo, bo)


if __name__ == "__main__":
    B, S, H, NUM_HEADS = 2, 8, 32, 4
    D = H // NUM_HEADS

    key = jax.random.PRNGKey(0)
    k_x, k_p = jax.random.split(key)
    x = jax.random.normal(k_x, (B, S, H), jnp.float32)
    params = init_params(k_p, H, D)

    ref = mqa_reference(x, params, NUM_HEADS)

    # 1) f32 path, exact softmax normalization.  Tolerance covers MXU pass
    #    precision plus the mathematically-identical reorderings (scale folded
    #    into K, normalization applied after P@V).
    out = mqa_forward(x, params, NUM_HEADS, use_approx_recip=False)
    out = jax.block_until_ready(out)
    np.testing.assert_allclose(np.asarray(out), np.asarray(ref),
                               rtol=1e-2, atol=1e-2)

    # 2) Fast path: bf16 MXU operands (f32 accumulation) + approx reciprocal.
    #    K/V are stored in bf16 after the f32 projection (standard trade-off).
    x_bf = x.astype(jnp.bfloat16)
    params_bf = tuple(p.astype(jnp.bfloat16) for p in params)
    out_bf = mqa_forward(x_bf, params_bf, NUM_HEADS)
    out_bf = jax.block_until_ready(out_bf)
    np.testing.assert_allclose(np.asarray(out_bf.astype(jnp.float32)),
                               np.asarray(ref), rtol=1e-1, atol=1e-1)

    print("KERNEL_OK")
</pallas_src>

<mosaic_0001>
module attributes {stable_mosaic.version = 11 : i64} {
  func.func @kv_proj_kernel(%arg0: i32, %arg1: i32, %arg2: memref<1x8x32xf32, #tpu.memory_space<vmem>>, %arg3: memref<32x8xf32, #tpu.memory_space<vmem>>, %arg4: memref<1x8xf32, #tpu.memory_space<vmem>>, %arg5: memref<32x8xf32, #tpu.memory_space<vmem>>, %arg6: memref<1x8xf32, #tpu.memory_space<vmem>>, %arg7: memref<1x8x8xf32, #tpu.memory_space<vmem>>, %arg8: memref<1x8x8xf32, #tpu.memory_space<vmem>>) attributes {dimension_semantics = [#tpu.dimension_semantics<parallel>, #tpu.dimension_semantics<parallel>], iteration_bounds = array<i64: 2, 1>, scalar_prefetch = 0 : i64, scratch_operands = 0 : i64, tpu.core_type = #tpu.core_type<tc>, window_params = [{transform_indices = @transform_0, window_bounds = array<i64: 1, 8, 32>}, {pipeline_mode = #tpu.pipeline_mode<synchronous>, transform_indices = @transform_1, window_bounds = array<i64: 32, 8>}, {pipeline_mode = #tpu.pipeline_mode<synchronous>, transform_indices = @transform_2, window_bounds = array<i64: 1, 8>}, {pipeline_mode = #tpu.pipeline_mode<synchronous>, transform_indices = @transform_3, window_bounds = array<i64: 32, 8>}, {pipeline_mode = #tpu.pipeline_mode<synchronous>, transform_indices = @transform_4, window_bounds = array<i64: 1, 8>}, {transform_indices = @transform_5, window_bounds = array<i64: 1, 8, 8>}, {transform_indices = @transform_6, window_bounds = array<i64: 1, 8, 8>}]} {
    %c0 = arith.constant 0 : index
    %c0_0 = arith.constant 0 : index
    %c0_1 = arith.constant 0 : index
    %0 = vector.load %arg2[%c0, %c0_0, %c0_1] : memref<1x8x32xf32, #tpu.memory_space<vmem>>, vector<1x8x32xf32>
    %1 = vector.shape_cast %0 : vector<1x8x32xf32> to vector<8x32xf32>
    %c0_2 = arith.constant 0 : index
    %c0_3 = arith.constant 0 : index
    %2 = vector.load %arg3[%c0_2, %c0_3] : memref<32x8xf32, #tpu.memory_space<vmem>>, vector<32x8xf32>
    %cst = arith.constant dense<0.000000e+00> : vector<8x8xf32>
    %3 = tpu.matmul %1, %2, %cst {dimension_numbers = #tpu.dot_dimension_numbers<[1], [0], [0], [1], [0, 0, 1, 1], [], []>} : vector<8x32xf32>, vector<32x8xf32>, vector<8x8xf32> -> vector<8x8xf32>
    %c0_4 = arith.constant 0 : index
    %c0_5 = arith.constant 0 : index
    %4 = vector.load %arg4[%c0_4, %c0_5] : memref<1x8xf32, #tpu.memory_space<vmem>>, vector<1x8xf32>
    %5 = vector.broadcast %4 : vector<1x8xf32> to vector<8x8xf32>
    %6 = arith.addf %3, %5 : vector<8x8xf32>
    %c0_6 = arith.constant 0 : index
    %c0_7 = arith.constant 0 : index
    %7 = vector.load %arg5[%c0_6, %c0_7] : memref<32x8xf32, #tpu.memory_space<vmem>>, vector<32x8xf32>
    %cst_8 = arith.constant dense<0.000000e+00> : vector<8x8xf32>
    %8 = tpu.matmul %1, %7, %cst_8 {dimension_numbers = #tpu.dot_dimension_numbers<[1], [0], [0], [1], [0, 0, 1, 1], [], []>} : vector<8x32xf32>, vector<32x8xf32>, vector<8x8xf32> -> vector<8x8xf32>
    %c0_9 = arith.constant 0 : index
    %c0_10 = arith.constant 0 : index
    %9 = vector.load %arg6[%c0_9, %c0_10] : memref<1x8xf32, #tpu.memory_space<vmem>>, vector<1x8xf32>
    %10 = vector.broadcast %9 : vector<1x8xf32> to vector<8x8xf32>
    %11 = arith.addf %8, %10 : vector<8x8xf32>
    %cst_11 = arith.constant 0.353553385 : f32
    %12 = vector.broadcast %cst_11 : f32 to vector<8x8xf32>
    %13 = arith.mulf %6, %12 : vector<8x8xf32>
    %c0_12 = arith.constant 0 : index
    %c0_13 = arith.constant 0 : index
    %c0_14 = arith.constant 0 : index
    %14 = vector.load %arg7[%c0_12, %c0_13, %c0_14] : memref<1x8x8xf32, #tpu.memory_space<vmem>>, vector<1x8x8xf32>
    %15 = vector.shape_cast %14 : vector<1x8x8xf32> to vector<8x8xf32>
    %16 = vector.shape_cast %13 : vector<8x8xf32> to vector<1x8x8xf32>
    tpu.vector_store %arg7[%c0_12, %c0_13, %c0_14], %16 {strides = array<i32>} : memref<1x8x8xf32, #tpu.memory_space<vmem>>, vector<1x8x8xf32>,
    %c0_15 = arith.constant 0 : index
    %c0_16 = arith.constant 0 : index
    %c0_17 = arith.constant 0 : index
    %17 = vector.load %arg8[%c0_15, %c0_16, %c0_17] : memref<1x8x8xf32, #tpu.memory_space<vmem>>, vector<1x8x8xf32>
    %18 = vector.shape_cast %17 : vector<1x8x8xf32> to vector<8x8xf32>
    %19 = vector.shape_cast %11 : vector<8x8xf32> to vector<1x8x8xf32>
    tpu.vector_store %arg8[%c0_15, %c0_16, %c0_17], %19 {strides = array<i32>} : memref<1x8x8xf32, #tpu.memory_space<vmem>>, vector<1x8x8xf32>,
    return
  }
  func.func @transform_0(%arg0: i32, %arg1: i32) -> (i32, i32, i32) {
    %c0_i32 = arith.constant 0 : i32
    %c0_i32_0 = arith.constant 0 : i32
    return %arg0, %arg1, %c0_i32 : i32, i32, i32
  }
  func.func @transform_1(%arg0: i32, %arg1: i32) -> (i32, i32) {
    %c0_i32 = arith.constant 0 : i32
    %c0_i32_0 = arith.constant 0 : i32
    %c0_i32_1 = arith.constant 0 : i32
    return %c0_i32, %c0_i32_0 : i32, i32
  }
  func.func @transform_2(%arg0: i32, %arg1: i32) -> (i32, i32) {
    %c0_i32 = arith.constant 0 : i32
    %c0_i32_0 = arith.constant 0 : i32
    %c0_i32_1 = arith.constant 0 : i32
    return %c0_i32, %c0_i32_0 : i32, i32
  }
  func.func @transform_3(%arg0: i32, %arg1: i32) -> (i32, i32) {
    %c0_i32 = arith.constant 0 : i32
    %c0_i32_0 = arith.constant 0 : i32
    %c0_i32_1 = arith.constant 0 : i32
    return %c0_i32, %c0_i32_0 : i32, i32
  }
  func.func @transform_4(%arg0: i32, %arg1: i32) -> (i32, i32) {
    %c0_i32 = arith.constant 0 : i32
    %c0_i32_0 = arith.constant 0 : i32
    %c0_i32_1 = arith.constant 0 : i32
    return %c0_i32, %c0_i32_0 : i32, i32
  }
  func.func @transform_5(%arg0: i32, %arg1: i32) -> (i32, i32, i32) {
    %c0_i32 = arith.constant 0 : i32
    %c0_i32_0 = arith.constant 0 : i32
    return %arg0, %arg1, %c0_i32 : i32, i32, i32
  }
  func.func @transform_6(%arg0: i32, %arg1: i32) -> (i32, i32, i32) {
    %c0_i32 = arith.constant 0 : i32
    %c0_i32_0 = arith.constant 0 : i32
    return %arg0, %arg1, %c0_i32 : i32, i32, i32
  }
}

</mosaic_0001>

<bundles_post_ra>
// kernel: tpu_custom_call.1
= control target key start
LH: loop header
LB: loop body
LE: loop exit
PB: predicated region body
PF: predicated region fallthrough
CT: control target
= control target key end

     0   :  { %12 = vsyncpa [#allocation3], 0  ;;  %s1046_s0 = inlined_call_operand.vmem [shape: f32[2,8,32], index: 0, kind: input, shape index: {}]   ;;  %s1047_s1 = inlined_call_operand.vmem [shape: f32[32,8], index: 1, kind: input, shape index: {}]   ;;  %s1048_s2 = inlined_call_operand.vmem [shape: f32[1,8], index: 2, kind: input, shape index: {}]   ;;  %s1049_s3 = inlined_call_operand.vmem [shape: f32[32,8], index: 3, kind: input, shape index: {}]   ;;  %s1050_s4 = inlined_call_operand.vmem [shape: f32[1,8], index: 4, kind: input, shape index: {}]   ;;  %s1051_s5 = inlined_call_operand.hbm [shape: f32[2,8,8], index: 5, kind: output, shape index: {0}]   ;;  %s1052_s6 = inlined_call_operand.hbm [shape: f32[2,8,8], index: 6, kind: output, shape index: {1}]  }
   0x1   :  { %14 = vsyncpa [#allocation3 + $0x1], 0 }
   0x2   :  { %15 = vsyncpa [#allocation5], 0 }
   0x3   :  { %17 = vsyncpa [#allocation5 + $0x1], 0  ;;  %s871_s21 = smov 0   ;;  %s873_s22 = smov 0  }
   0x4   :  { %s875_s23 = smov 0   ;;  %s877_s24 = smov 0  }
   0x5   :  { %s879_s25 = smov 0   ;;  %s881_s26 = smov 0  }
   0x6 LB: > { %s594_s27 = sadd.s32 4294967295, %s829_s26   ;;  %s595_s28 = sadd.s32 4294967294, %s829_s26   ;;  %s829_s26 = sphi %s881_s26, %s23_s26   ;;  %s825_s25 = sphi %s879_s25, %s1059_s25   ;;  %s821_s24 = sphi %s877_s24, %s1058_s24   ;;  %s817_s23 = sphi %s875_s23, %s1057_s23   ;;  %s813_s22 = sphi %s873_s22, %s1056_s22   ;;  %s809_s21 = sphi %s871_s21, %s1055_s21  }
   0x7   : > { %s35_s29 = sadd.s32 1, %s825_s25  ;;  %s156_s30 = sadd.s32 1, %s817_s23 }
   0x8   : > { %p37_p0 = scmp.ge.s32.totalorder %s35_s29, 2  ;;  %p166_p1 = scmp.ne.s32.totalorder %s817_s23, %s813_s22 }
   0x9   : > { %p167_p2 = scmp.eq.s32.totalorder %s594_s27, 1  ;;  %p172_p3 = scmp.ne.s32.totalorder %s813_s22, %s809_s21 }
   0xa   : > { %s1061_s29 = smov (%p37_p0, %s35_s29), 0  ;;  %p173_p5 = scmp.eq.s32.totalorder %s595_s28, 1 }
   0xb   : > { %p911_p4 = por %p167_p2, %p166_p1  ;;  %s151_s8 = ssub.s32 %s825_s25, %s1061_s29 }
   0xc   : > { %p598_p6 = scmp.ge.s32.totalorder %s829_s26, 1  ;;  %p154_p7 = scmp.eq.s32.totalorder %s151_s8, 0 }
   0xd   : > { %p918_p8 = por %p173_p5, %p172_p3  ;;  %p241_p9 = scmp.lt.s32.totalorder %s829_s26, 3 }
   0xe   : > { %s924_s10 = scalar_select %p154_p7, %s817_s23, %s156_s30  }
   0xf   : > { %p242_p10 = pnand %p598_p6, %p241_p9 }
  0x10   : > { %v286_v0 = vld [vmem:[%s1047_s1] sm:$0xff] (!%p242_p10)  ;;  %v287_v1 = vld [vmem:[%s1047_s1 + $0x8] sm:$0xff] (!%p242_p10)  ;;  %v831_v3 = vmov (!%p242_p10), 0.0|0.0   ;;  %v288_v6 = vld [vmem:[%s1047_s1 + $0x10] sm:$0xff] (!%p242_p10)  ;;  %p278_p11 = scmp.lt.s32.totalorder (!%p242_p10), %s821_s24, 1  ;;  %vm832_vm0 = vmmov (!%p242_p10), 0  }
  0x11   : > { %245 = sbr.rel (%p242_p10) target bundleno = 282 (0x11a), region = 40  ;;  %v371_v2 = vld [vmem:[%s1049_s3] sm:$0xff] (!%p242_p10)  ;;  %644 = vmatprep.subr.bf16.mxu0 (!%p242_p10), %v831_v3  ;;  %v645_v4 = vpack.c.bf16 (!%p242_p10), %v287_v1, %v286_v0  ;;  %650 = vmatprep.subr.bf16.mxu1 (!%p242_p10), %v831_v3  ;;  %v372_v5 = vld [vmem:[%s1049_s3 + $0x8] sm:$0xff] (!%p242_p10)  ;;  %v289_v7 = vld [vmem:[%s1047_s1 + $0x18] sm:$0xff] (!%p242_p10)  ;;  %v833_v11 = vmov (!%p242_p10), 0.0   ;;  %vm297_vm1 = vcmask (!%p242_p10), 261120  }
  0x12   : > { %v651_v8 = vpack.c.bf16 (!%p242_p10), %v372_v5, %v371_v2  ;;  %v373_v9 = vld [vmem:[%s1049_s3 + $0x10] sm:$0xff] (!%p242_p10)  ;;  %v374_v10 = vld [vmem:[%s1049_s3 + $0x18] sm:$0xff] (!%p242_p10)  ;;  %630 = vmatprep.mubr.msk.f32.mxu0 (!%p242_p10), %vm832_vm0, %v833_v11  ;;  %641 = vmatprep.mubr.msk.f32.mxu1 (!%p242_p10), %vm832_vm0, %v833_v11  ;;  %v648_v12 = vpack.c.bf16 (!%p242_p10), %v289_v7, %v288_v6  ;;  %s956_s18 = sand.u32 (!%p242_p10), 1, %s813_s22   ;;  %v602_v15 = vld [vmem:[%s1048_s2] ss:$0 sm:$0xff] (!%p242_p10)  ;;  %s608_s8 = sshll.u32 (!%p242_p10), %s821_s24, 7 }
  0x13   : > { %646 = vmatpush3.bf16.msra.mxu0 (!%p242_p10), %v645_v4  ;;  %v654_v13 = vpack.c.bf16 (!%p242_p10), %v374_v10, %v373_v9  ;;  %s599_s19 = sshll.u32 (!%p242_p10), %s956_s18, 3  ;;  %v604_v16 = vld [vmem:[%s1050_s4] ss:$0 sm:$0xff] (!%p242_p10)  ;;  %vm453_vm2 = vcmask (!%p242_p10), 64512   ;;  %s976_s20 = scalar_lea.hbm (!%p242_p10), %s1051_s5, %s608_s8 }
  0x14   : > { %652 = vmatpush3.bf16.msra.mxu1 (!%p242_p10), %v651_v8  ;;  %647 = vmatprep.subr.bf16.mxu0 (!%p242_p10), %v831_v3  ;;  %s277_s11 = scalar_lea.vmem (!%p242_p10), [#allocation4], %s599_s19  ;;  %s462_s27 = scalar_lea.sflag (!%p242_p10), [#allocation5], %s956_s18 }
  0x15   : > { %653 = vmatprep.subr.bf16.mxu1 (!%p242_p10), %v831_v3  ;;  %s490_s12 = sshll.u32 (!%p242_p10), %s277_s11, 4  ;;  %s834_s30 = smov (!%p242_p10), [#allocation4]   ;;  %s971_s12 = int_to_ptr.vmem [resolvable:$true] %s490_s12 }
  0x16   : > { %s719_s28 = scalar_lea.vmem (!%p242_p10), %s971_s12, 128  ;;  %s723_s15 = sshll.u32 (!%p242_p10), %s834_s30, 4  ;;  %s724_s15 = int_to_ptr.vmem [resolvable:$false] %s723_s15 }
  0x17   : > { %649 = vmatpush3.bf16.msra.mxu0 (!%p242_p10), %v648_v12  ;;  %p720_p12 = scmp.ne.s32.totalorder (!%p242_p10), %s971_s12, %s719_s28  ;;  %s725_s16 = scalar_lea.vmem (!%p242_p10), %s724_s15, 256 }
  0x18   : > { %s279_s13 = scalar_select %p278_p11, %s821_s24, 1  ;;  %655 = vmatpush3.bf16.msra.mxu1 %v654_v13 }
  0x19   : > { %p721_p13 = pnand %p720_p12, %p911_p4  ;;  %p726_p1 = scmp.lt.s32.totalorder %s971_s12, %s724_s15 }
  0x1a   : > { %s601_s14 = sshll.u32 %s279_s13, 3  ;;  %s270_s13 = scalar_lea.vmem [#allocation2], %s599_s19 }
  0x1b   : > { %s284_s17 = scalar_lea.vmem %s1046_s0, %s601_s14  ;;  %s476_s14 = sshll.u32 %s270_s13, 4  ;;  %s978_s14 = int_to_ptr.vmem [resolvable:$true] %s476_s14 }
  0x1c   : > { %v285_v14 = vld [vmem:[%s284_s17] sm:$0xff]  ;;  %s969_s17 = scalar_lea.hbm %s1052_s6, %s608_s8  ;;  %p722_p0 = pneg %p721_p13 }
  0x1d   : > { %631 = vmatmul.mubr.msk.f32.vlgmr.msra.gmra.mrb[0].mxu0 %vm297_vm1, %v285_v14  ;;  %642 = vmatmul.mubr.msk.f32.vlgmr.msra.gmra.mrb[0].mxu1 %vm297_vm1, %v285_v14  ;;  %p727_p2 = scmp.lt.s32.totalorder %s725_s16, %s719_s28 }
  0x1f   : > { %p728_p3 = por %p727_p2, %p726_p1 }
  0x21   : > { %p729_p5 = pnand %p728_p3, %p722_p0 }
  0xf0   : > { %v367_v17 = vpop.f32.mrb[0].mxu0  ;;  %v448_v20 = vpop.f32.mrb[0].mxu1 }
  0xf1   : > { %v368_v18 = vadd.f32 %v602_v15, %v367_v17  ;;  %v632_v19 = vpop.f32.mrb[1].mxu0  ;;  %v449_v21 = vadd.f32 %v604_v16, %v448_v20  ;;  %v643_v22 = vpop.f32.mrb[1].mxu1 }
  0xf3   : > { %v452_v23 = vmul.f32 0.35355338, %v368_v18  ;;  %455 = vst.msk [vmem:[%s277_s11] sm:$0xff] %vm453_vm2, %v449_v21 }
  0xf5   : > { %454 = vst.msk [vmem:[%s270_s13] sm:$0xff] %vm453_vm2, %v452_v23 }
  0xf6   : > { %732 = shalt.err (!%p729_p5)
}
  0xf7   : > { %s733_s8 = scalar_lea.hbm %s969_s17, 128  ;;  %s737_s24 = scalar_lea.hbm %s1052_s6, 256 }
  0xf8   : > { %p734_p6 = scmp.ne.s32.totalorder %s969_s17, %s733_s8  ;;  %p738_p10 = scmp.lt.u32.totalorder %s969_s17, %s1052_s6 }
  0xf9   : > { %p739_p11 = scmp.lt.u32.totalorder %s737_s24, %s733_s8  ;;  %p741_p13 = scmp.lt.u32.totalorder %s733_s8, %s969_s17 }
  0xfa   : > { %p735_p7 = pnand %p734_p6, %p911_p4 }
  0xfb   : > { %p740_p12 = por %p739_p11, %p738_p10 }
  0xfc   : > { %p736_p9 = pneg %p735_p7 }
  0xfd   : > { %p742_p0 = por %p741_p13, %p740_p12 }
  0xff   : > { %p743_p1 = pnand %p742_p0, %p736_p9 }
 0x101   : > { %746 = shalt.err (!%p743_p1)
}
 0x102   : > { %657 = dma.vmem_to_hbm [thread:$0]  (%p911_p4), %s971_s12, 128, %s969_s17, %s462_s27  }
 0x103   : > { %s457_s28 = scalar_lea.sflag [#allocation3], %s956_s18  ;;  %s747_s15 = scalar_lea.vmem %s978_s14, 128 }
 0x104   : > { %p748_p2 = scmp.ne.s32.totalorder %s978_s14, %s747_s15  ;;  %s835_s16 = smov [#allocation2]  }
 0x105   : > { %s751_s8 = sshll.u32 %s835_s16, 4  ;;  %s752_s8 = int_to_ptr.vmem [resolvable:$false] %s751_s8 }
 0x106   : > { %p749_p3 = pnand %p748_p2, %p911_p4  ;;  %s753_s11 = scalar_lea.vmem %s752_s8, 256 }
 0x107   : > { %p754_p6 = scmp.lt.s32.totalorder %s978_s14, %s752_s8  ;;  %p755_p7 = scmp.lt.s32.totalorder %s753_s11, %s747_s15 }
 0x108   : > { %p750_p5 = pneg %p749_p3 }
 0x109   : > { %p756_p9 = por %p755_p7, %p754_p6 }
 0x10b   : > { %p757_p10 = pnand %p756_p9, %p750_p5 }
 0x10d   : > { %760 = shalt.err (!%p757_p10)
}
 0x10e   : > { %s761_s18 = scalar_lea.hbm %s976_s20, 128  ;;  %s765_s27 = scalar_lea.hbm %s1051_s5, 256 }
 0x10f   : > { %p762_p11 = scmp.ne.s32.totalorder %s976_s20, %s761_s18  ;;  %p766_p0 = scmp.lt.u32.totalorder %s976_s20, %s1051_s5 }
 0x110   : > { %p767_p1 = scmp.lt.u32.totalorder %s765_s27, %s761_s18  ;;  %p769_p3 = scmp.lt.u32.totalorder %s761_s18, %s976_s20 }
 0x111   : > { %p763_p12 = pnand %p762_p11, %p911_p4 }
 0x112   : > { %p768_p2 = por %p767_p1, %p766_p0 }
 0x113   : > { %p764_p13 = pneg %p763_p12 }
 0x114   : > { %p770_p5 = por %p769_p3, %p768_p2 }
 0x116   : > { %p771_p6 = pnand %p770_p5, %p764_p13 }
 0x118   : > { %774 = shalt.err (!%p771_p6)
}
 0x119   : > { %656 = dma.vmem_to_hbm [thread:$0]  (%p911_p4), %s978_s14, 128, %s976_s20, %s457_s28  }
 0x11a PF: > { %p667_p7 = scmp.ge.s32.totalorder %s829_s26, 2  ;;  %s502_s19 = sand.u32 1, %s809_s21  }
 0x11b   : > { %s503_s30 = scalar_lea.sflag [#allocation3], %s502_s19 }
 0x11c   : > { %p661_p9 = pnand %p667_p7, %p918_p8 }
 0x11e   : > { %800 = dma.done.wait (!%p661_p9), %s503_s30, 128  }
 0x11f   : > { %802 = vsyncadd (!%p661_p9), %s503_s30, 4294967168  ;;  %s512_s15 = scalar_lea.sflag [#allocation5], %s502_s19 }
 0x120   : > { %804 = dma.done.wait (!%p661_p9), %s512_s15, 128  }
 0x121   : > { %806 = vsyncadd (!%p661_p9), %s512_s15, 4294967168  ;;  %s23_s26 = sadd.s32 1, %s829_s26   ;;  %s1055_s21 = smov %s813_s22 }
 0x122   : > { %p20_p10 = scmp.ge.s32.totalorder %s23_s26, 4   ;;  %s1056_s22 = smov %s817_s23 }
 0x123   : > { %s1057_s23 = smov %s924_s10  ;;  %s1058_s24 = smov %s825_s25 }
 0x124   : > { %s1059_s25 = smov %s1061_s29  ;;  %22 = sbr.rel (!%p20_p10) target bundleno = 6 (0x6), region = 92 }
 0x12b   :  { %517 = vsyncpa [#allocation3], 1 }
 0x12c   :  { %519 = vsyncpa [#allocation3 + $0x1], 1 }
 0x12d   :  { %520 = vsyncpa [#allocation5], 1 }
 0x12e   :  { %522 = vsyncpa [#allocation5 + $0x1], 1 }

</bundles_post_ra>
